<compile_context>
chip_gen: v7x
topology: tpu7x:2x2x1
jax: 0.10.0
libtpu: 0.0.40
codegen_flags: <defaults>
</compile_context>

<pallas_src>
import functools

import jax
import jax.numpy as jnp
from jax import lax
from jax.experimental import pallas as pl
from jax.experimental.pallas import tpu as pltpu


def _factorized_reduce_kernel(x_ref, w_ref, gamma_ref, beta_ref, o_ref,
                              *, C_in, C_half, L, eps):
    # One conv branch (= one channel group) per grid step.
    #   x_ref:     (1, C_in,   L)   picked input pixels, lanes = (n, oh, ow), L = N*OHW
    #   w_ref:     (1, C_half, C_in)
    #   gamma_ref: (1, C_half, 1)
    #   beta_ref:  (1, C_half, 1)
    #   o_ref:     (1, C_half, L)   lane-dense output slab
    xr = jnp.maximum(x_ref[0].astype(jnp.float32), 0.0)           # ReLU, (C_in, L)
    w = w_ref[0].astype(jnp.float32)                               # (C_half, C_in)

    # 1x1 channel mix on the VPU: C_in full-tile FMAs into a (C_half, L) accumulator.
    acc = w[:, 0:1] * xr[0:1, :]
    for ci in range(1, C_in):
        acc = acc + w[:, ci:ci + 1] * xr[ci:ci + 1, :]

    # Fused BatchNorm2d (training mode): per-channel batch mean / biased variance,
    # single pass (sum + sum of squares) over the conv tile that is already live.
    inv_cnt = 1.0 / float(L)
    s = jnp.sum(acc, axis=1, keepdims=True)                        # (C_half, 1)
    sq = jnp.sum(acc * acc, axis=1, keepdims=True)                 # (C_half, 1)
    mean = s * inv_cnt
    var = jnp.maximum(sq * inv_cnt - mean * mean, 0.0)
    inv_std = lax.rsqrt(var + eps)
    scale = gamma_ref[0] * inv_std                                 # (C_half, 1)
    shift = beta_ref[0] - mean * scale                             # (C_half, 1)

    o_ref[0] = (acc * scale + shift).astype(o_ref.dtype)           # whole-row store


def factorized_reduce_forward(x_nchw, w1, w2, gamma, beta, *, eps=1e-5):
    N, C_in, H, W = x_nchw.shape
    C_half = w1.shape[0]
    C_out = 2 * C_half
    assert w2.shape[0] == C_half
    assert H % 2 == 0 and W % 2 == 0, "FactorizedReduce needs even spatial dims"
    Hh, Wh = H // 2, W // 2
    OHW = Hh * Wh
    L = N * OHW                                                   # lane axis length

    # Stage the stride-2 / offset-(d,d) pixel picks at data-staging time and lay them
    # out channel-major with a lane-dense (n, oh, ow) axis.  No dtype cast of x here
    # (the kernel casts after load).
    def _pick(d):
        xd = x_nchw[:, :, d::2, d::2]                              # (N, C_in, Hh, Wh)
        return jnp.transpose(xd, (1, 0, 2, 3)).reshape(C_in, L)
    xp = jnp.stack([_pick(0), _pick(1)], axis=0)                   # (2, C_in, L)

    wb = jnp.stack([w1[:, :, 0, 0], w2[:, :, 0, 0]], axis=0).astype(jnp.float32)
    gb = gamma.reshape(2, C_half, 1).astype(jnp.float32)
    bb = beta.reshape(2, C_half, 1).astype(jnp.float32)

    flops = int(2 * 2 * C_half * C_in * L                          # channel mix (both branches)
                + 2 * 8 * C_half * L)                              # ReLU + BN stats + apply (rough)
    bytes_accessed = int(xp.size * xp.dtype.itemsize
                         + 4 * (wb.size + gb.size + bb.size)
                         + 4 * 2 * C_half * L)
    cost = pl.CostEstimate(flops=flops, transcendentals=int(C_out),
                           bytes_accessed=bytes_accessed)

    kernel = functools.partial(_factorized_reduce_kernel,
                               C_in=C_in, C_half=C_half, L=L, eps=eps)

    out = pl.pallas_call(
        kernel,
        grid=(2,),                                                 # one branch per program
        out_shape=jax.ShapeDtypeStruct((2, C_half, L), jnp.float32),
        in_specs=[
            pl.BlockSpec((1, C_in, L), lambda g: (g, 0, 0)),       # picked input
            pl.BlockSpec((1, C_half, C_in), lambda g: (g, 0, 0)),  # conv weights
            pl.BlockSpec((1, C_half, 1), lambda g: (g, 0, 0)),     # gamma
            pl.BlockSpec((1, C_half, 1), lambda g: (g, 0, 0)),     # beta
        ],
        out_specs=pl.BlockSpec((1, C_half, L), lambda g: (g, 0, 0)),
        compiler_params=pltpu.CompilerParams(
            dimension_semantics=("parallel",)),                    # 2 TCs on v7x
        cost_estimate=cost,
    )(xp, wb, gb, bb)

    # Cheap final rearrange back to NCHW with torch.cat channel order
    # [conv_1 (branch 0) | conv_2 (branch 1)].
    out = out.reshape(2, C_half, N, Hh, Wh).transpose(2, 0, 1, 3, 4)
    return out.reshape(N, C_out, Hh, Wh)


# ---------------------------------------------------------------------------------
# Pure-JAX reference for the correctness check
# ---------------------------------------------------------------------------------
def factorized_reduce_reference(x, w1, w2, gamma, beta, *, eps=1e-5):
    xr = jnp.maximum(x.astype(jnp.float32), 0.0)
    dn = ("NCHW", "OIHW", "NCHW")
    c1 = lax.conv_general_dilated(xr, w1.astype(jnp.float32), (2, 2), "VALID",
                                  dimension_numbers=dn)
    c2 = lax.conv_general_dilated(xr[:, :, 1:, 1:], w2.astype(jnp.float32), (2, 2),
                                  "VALID", dimension_numbers=dn)
    y = jnp.concatenate([c1, c2], axis=1)
    mean = jnp.mean(y, axis=(0, 2, 3), keepdims=True)
    var = jnp.mean((y - mean) ** 2, axis=(0, 2, 3), keepdims=True)
    yhat = (y - mean) / jnp.sqrt(var + eps)
    return yhat * gamma.reshape(1, -1, 1, 1) + beta.reshape(1, -1, 1, 1)


if __name__ == "__main__":
    # FactorizedReduce(C_in=4, C_out=8) on a (2, 4, 16, 16) input.
    N, C_in, C_out, H, W = 2, 4, 8, 16, 16
    C_half = C_out // 2

    key = jax.random.PRNGKey(0)
    kx, k1, k2, kg, kb = jax.random.split(key, 5)
    x = jax.random.normal(kx, (N, C_in, H, W), dtype=jnp.float32)
    w1 = jax.random.normal(k1, (C_half, C_in, 1, 1), dtype=jnp.float32) * 0.3
    w2 = jax.random.normal(k2, (C_half, C_in, 1, 1), dtype=jnp.float32) * 0.3
    gamma = 1.0 + 0.1 * jax.random.normal(kg, (C_out,), dtype=jnp.float32)
    beta = 0.1 * jax.random.normal(kb, (C_out,), dtype=jnp.float32)

    out = factorized_reduce_forward(x, w1, w2, gamma, beta)
    out = jax.block_until_ready(out)

    ref = factorized_reduce_reference(x, w1, w2, gamma, beta)
    ref = jax.block_until_ready(ref)

    assert out.shape == (N, C_out, H // 2, W // 2), out.shape
    max_err = float(jnp.max(jnp.abs(out - ref)))
    assert jnp.allclose(out, ref, atol=1e-4, rtol=1e-4), max_err
    print("KERNEL_OK")
</pallas_src>

<mosaic_0001>
module attributes {stable_mosaic.version = 11 : i64} {
  func.func @_factorized_reduce_kernel(%arg0: i32, %arg1: memref<1x4x128xf32, #tpu.memory_space<vmem>>, %arg2: memref<1x4x4xf32, #tpu.memory_space<vmem>>, %arg3: memref<1x4x1xf32, #tpu.memory_space<vmem>>, %arg4: memref<1x4x1xf32, #tpu.memory_space<vmem>>, %arg5: memref<1x4x128xf32, #tpu.memory_space<vmem>>) attributes {dimension_semantics = [#tpu.dimension_semantics<parallel>], iteration_bounds = array<i64: 2>, scalar_prefetch = 0 : i64, scratch_operands = 0 : i64, tpu.core_type = #tpu.core_type<tc>, window_params = [{transform_indices = @transform_0, window_bounds = array<i64: 1, 4, 128>}, {transform_indices = @transform_1, window_bounds = array<i64: 1, 4, 4>}, {transform_indices = @transform_2, window_bounds = array<i64: 1, 4, 1>}, {transform_indices = @transform_3, window_bounds = array<i64: 1, 4, 1>}, {transform_indices = @transform_4, window_bounds = array<i64: 1, 4, 128>}]} {
    %c0 = arith.constant 0 : index
    %c0_0 = arith.constant 0 : index
    %c0_1 = arith.constant 0 : index
    %0 = vector.load %arg1[%c0, %c0_0, %c0_1] : memref<1x4x128xf32, #tpu.memory_space<vmem>>, vector<1x4x128xf32>
    %1 = vector.shape_cast %0 : vector<1x4x128xf32> to vector<4x128xf32>
    %cst = arith.constant 0.000000e+00 : f32
    %2 = vector.broadcast %cst : f32 to vector<4x128xf32>
    %3 = arith.maximumf %1, %2 : vector<4x128xf32>
    %c0_2 = arith.constant 0 : index
    %c0_3 = arith.constant 0 : index
    %c0_4 = arith.constant 0 : index
    %4 = vector.load %arg2[%c0_2, %c0_3, %c0_4] : memref<1x4x4xf32, #tpu.memory_space<vmem>>, vector<1x4x4xf32>
    %5 = vector.shape_cast %4 : vector<1x4x4xf32> to vector<4x4xf32>
    %6 = vector.extract_strided_slice %5 {offsets = [0, 0], sizes = [4, 1], strides = [1, 1]} : vector<4x4xf32> to vector<4x1xf32>
    %7 = vector.extract_strided_slice %3 {offsets = [0, 0], sizes = [1, 128], strides = [1, 1]} : vector<4x128xf32> to vector<1x128xf32>
    %8 = vector.broadcast %6 : vector<4x1xf32> to vector<4x128xf32>
    %9 = vector.broadcast %7 : vector<1x128xf32> to vector<4x128xf32>
    %10 = arith.mulf %8, %9 : vector<4x128xf32>
    %11 = vector.extract_strided_slice %5 {offsets = [0, 1], sizes = [4, 1], strides = [1, 1]} : vector<4x4xf32> to vector<4x1xf32>
    %12 = vector.extract_strided_slice %3 {offsets = [1, 0], sizes = [1, 128], strides = [1, 1]} : vector<4x128xf32> to vector<1x128xf32>
    %13 = vector.broadcast %11 : vector<4x1xf32> to vector<4x128xf32>
    %14 = vector.broadcast %12 : vector<1x128xf32> to vector<4x128xf32>
    %15 = arith.mulf %13, %14 : vector<4x128xf32>
    %16 = arith.addf %10, %15 : vector<4x128xf32>
    %17 = vector.extract_strided_slice %5 {offsets = [0, 2], sizes = [4, 1], strides = [1, 1]} : vector<4x4xf32> to vector<4x1xf32>
    %18 = vector.extract_strided_slice %3 {offsets = [2, 0], sizes = [1, 128], strides = [1, 1]} : vector<4x128xf32> to vector<1x128xf32>
    %19 = vector.broadcast %17 : vector<4x1xf32> to vector<4x128xf32>
    %20 = vector.broadcast %18 : vector<1x128xf32> to vector<4x128xf32>
    %21 = arith.mulf %19, %20 : vector<4x128xf32>
    %22 = arith.addf %16, %21 : vector<4x128xf32>
    %23 = vector.extract_strided_slice %5 {offsets = [0, 3], sizes = [4, 1], strides = [1, 1]} : vector<4x4xf32> to vector<4x1xf32>
    %24 = vector.extract_strided_slice %3 {offsets = [3, 0], sizes = [1, 128], strides = [1, 1]} : vector<4x128xf32> to vector<1x128xf32>
    %25 = vector.broadcast %23 : vector<4x1xf32> to vector<4x128xf32>
    %26 = vector.broadcast %24 : vector<1x128xf32> to vector<4x128xf32>
    %27 = arith.mulf %25, %26 : vector<4x128xf32>
    %28 = arith.addf %22, %27 : vector<4x128xf32>
    %cst_5 = arith.constant dense<0.000000e+00> : vector<4xf32>
    %29 = vector.multi_reduction <add>, %28, %cst_5 [1] : vector<4x128xf32> to vector<4xf32>
    %30 = vector.shape_cast %29 : vector<4xf32> to vector<4x1xf32>
    %31 = arith.mulf %28, %28 : vector<4x128xf32>
    %cst_6 = arith.constant dense<0.000000e+00> : vector<4xf32>
    %32 = vector.multi_reduction <add>, %31, %cst_6 [1] : vector<4x128xf32> to vector<4xf32>
    %33 = vector.shape_cast %32 : vector<4xf32> to vector<4x1xf32>
    %cst_7 = arith.constant 7.812500e-03 : f32
    %34 = vector.broadcast %cst_7 : f32 to vector<4x1xf32>
    %35 = arith.mulf %30, %34 : vector<4x1xf32>
    %cst_8 = arith.constant 7.812500e-03 : f32
    %36 = vector.broadcast %cst_8 : f32 to vector<4x1xf32>
    %37 = arith.mulf %33, %36 : vector<4x1xf32>
    %38 = arith.mulf %35, %35 : vector<4x1xf32>
    %39 = arith.subf %37, %38 : vector<4x1xf32>
    %cst_9 = arith.constant 0.000000e+00 : f32
    %40 = vector.broadcast %cst_9 : f32 to vector<4x1xf32>
    %41 = arith.maximumf %39, %40 : vector<4x1xf32>
    %cst_10 = arith.constant 9.99999974E-6 : f32
    %42 = vector.broadcast %cst_10 : f32 to vector<4x1xf32>
    %43 = arith.addf %41, %42 : vector<4x1xf32>
    %44 = math.rsqrt %43 : vector<4x1xf32>
    %c0_11 = arith.constant 0 : index
    %c0_12 = arith.constant 0 : index
    %c0_13 = arith.constant 0 : index
    %45 = vector.load %arg3[%c0_11, %c0_12, %c0_13] : memref<1x4x1xf32, #tpu.memory_space<vmem>>, vector<1x4x1xf32>
    %46 = vector.shape_cast %45 : vector<1x4x1xf32> to vector<4x1xf32>
    %47 = arith.mulf %46, %44 : vector<4x1xf32>
    %c0_14 = arith.constant 0 : index
    %c0_15 = arith.constant 0 : index
    %c0_16 = arith.constant 0 : index
    %48 = vector.load %arg4[%c0_14, %c0_15, %c0_16] : memref<1x4x1xf32, #tpu.memory_space<vmem>>, vector<1x4x1xf32>
    %49 = vector.shape_cast %48 : vector<1x4x1xf32> to vector<4x1xf32>
    %50 = arith.mulf %35, %47 : vector<4x1xf32>
    %51 = arith.subf %49, %50 : vector<4x1xf32>
    %52 = vector.broadcast %47 : vector<4x1xf32> to vector<4x128xf32>
    %53 = arith.mulf %28, %52 : vector<4x128xf32>
    %54 = vector.broadcast %51 : vector<4x1xf32> to vector<4x128xf32>
    %55 = arith.addf %53, %54 : vector<4x128xf32>
    %c0_17 = arith.constant 0 : index
    %c0_18 = arith.constant 0 : index
    %c0_19 = arith.constant 0 : index
    %56 = vector.load %arg5[%c0_17, %c0_18, %c0_19] : memref<1x4x128xf32, #tpu.memory_space<vmem>>, vector<1x4x128xf32>
    %57 = vector.shape_cast %56 : vector<1x4x128xf32> to vector<4x128xf32>
    %58 = vector.shape_cast %55 : vector<4x128xf32> to vector<1x4x128xf32>
    tpu.vector_store %arg5[%c0_17, %c0_18, %c0_19], %58 {strides = array<i32>} : memref<1x4x128xf32, #tpu.memory_space<vmem>>, vector<1x4x128xf32>,
    return
  }
  func.func @transform_0(%arg0: i32) -> (i32, i32, i32) {
    %c0_i32 = arith.constant 0 : i32
    %c0_i32_0 = arith.constant 0 : i32
    %c0_i32_1 = arith.constant 0 : i32
    return %arg0, %c0_i32, %c0_i32_0 : i32, i32, i32
  }
  func.func @transform_1(%arg0: i32) -> (i32, i32, i32) {
    %c0_i32 = arith.constant 0 : i32
    %c0_i32_0 = arith.constant 0 : i32
    %c0_i32_1 = arith.constant 0 : i32
    return %arg0, %c0_i32, %c0_i32_0 : i32, i32, i32
  }
  func.func @transform_2(%arg0: i32) -> (i32, i32, i32) {
    %c0_i32 = arith.constant 0 : i32
    %c0_i32_0 = arith.constant 0 : i32
    %c0_i32_1 = arith.constant 0 : i32
    return %arg0, %c0_i32, %c0_i32_0 : i32, i32, i32
  }
  func.func @transform_3(%arg0: i32) -> (i32, i32, i32) {
    %c0_i32 = arith.constant 0 : i32
    %c0_i32_0 = arith.constant 0 : i32
    %c0_i32_1 = arith.constant 0 : i32
    return %arg0, %c0_i32, %c0_i32_0 : i32, i32, i32
  }
  func.func @transform_4(%arg0: i32) -> (i32, i32, i32) {
    %c0_i32 = arith.constant 0 : i32
    %c0_i32_0 = arith.constant 0 : i32
    %c0_i32_1 = arith.constant 0 : i32
    return %arg0, %c0_i32, %c0_i32_0 : i32, i32, i32
  }
}

</mosaic_0001>

<bundles_post_ra>
// kernel: tpu_custom_call.1
= control target key start
LH: loop header
LB: loop body
LE: loop exit
PB: predicated region body
PF: predicated region fallthrough
CT: control target
= control target key end

     0   :  { %9 = vsyncpa [#allocation3], 0  ;;  %s702_s0 = inlined_call_operand.vmem [shape: f32[2,4,128], index: 0, kind: input, shape index: {}]   ;;  %s703_s1 = inlined_call_operand.vmem [shape: f32[2,4,4], index: 1, kind: input, shape index: {}]   ;;  %s704_s2 = inlined_call_operand.vmem [shape: f32[2,4,1], index: 2, kind: input, shape index: {}]   ;;  %s705_s3 = inlined_call_operand.vmem [shape: f32[2,4,1], index: 3, kind: input, shape index: {}]   ;;  %s706_s4 = inlined_call_operand.hbm [shape: f32[2,4,128], index: 4, kind: output, shape index: {}]  }
   0x1   :  { %11 = vsyncpa [#allocation3 + $0x1], 0  ;;  %s587_s15 = smov 0   ;;  %s589_s16 = smov 0  }
   0x2   :  { %s591_s17 = smov 0   ;;  %s593_s18 = smov 0  }
   0x3 LB: > { %s608_s19 = sadd.s32 4294967295, %s555_s18   ;;  %s429_s20 = sadd.s32 4294967294, %s555_s18   ;;  %s555_s18 = sphi %s593_s18, %s712_s18   ;;  %s551_s17 = sphi %s591_s17, %s711_s17   ;;  %s547_s16 = sphi %s589_s16, %s710_s16   ;;  %s543_s15 = sphi %s587_s15, %s709_s15  }
   0x4   : > { %s612_s21 = sadd.s32 1, %s555_s18   ;;  %s128_s22 = sadd.s32 1, %s551_s17 }
   0x5   : > { %s125_s23 = ssub.s32 %s555_s18, %s612_s21  ;;  %p138_p0 = scmp.ne.s32.totalorder %s551_s17, %s547_s16 }
   0x6   : > { %p126_p1 = scmp.eq.s32.totalorder %s125_s23, 0  ;;  %p139_p2 = scmp.eq.s32.totalorder %s608_s19, 1 }
   0x7   : > { %p144_p3 = scmp.ne.s32.totalorder %s547_s16, %s543_s15  ;;  %p145_p4 = scmp.eq.s32.totalorder %s429_s20, 1 }
   0x8   : > { %s623_s24 = scalar_select %p126_p1, %s551_s17, %s128_s22  }
   0x9   : > { %p625_p5 = por %p139_p2, %p138_p0  ;;  %p629_p6 = por %p145_p4, %p144_p3 }
   0xa   : > { %p432_p7 = scmp.ge.s32.totalorder %s555_s18, 1  ;;  %p191_p8 = scmp.lt.s32.totalorder %s555_s18, 3 }
   0xc   : > { %p192_p9 = pnand %p432_p7, %p191_p8 }
   0xd   : > { %p228_p10 = scmp.lt.s32.totalorder (!%p192_p9), %s608_s19, 1  ;;  %v557_v0 = vmov (!%p192_p9), 0   ;;  %v558_v1 = vmov (!%p192_p9), 2   ;;  %v559_v3 = vmov (!%p192_p9), 1   ;;  %v560_v4 = vmov (!%p192_p9), 3   ;;  %s225_s20 = sand.u32 (!%p192_p9), 1, %s547_s16  }
   0xe   : > { %195 = sbr.rel (%p192_p9) target bundleno = 481 (0x1e1), region = 36  ;;  %485 = vset.pattern.permute.xlu0 (!%p192_p9), %v557_v0  ;;  %487 = vset.pattern.permute.xlu1 (!%p192_p9), %v558_v1  ;;  %v252_v5 = vlaneseq (!%p192_p9)  ;;  %vm287_vm0 = vcmask (!%p192_p9), 1043456   ;;  %s433_s22 = sshll.u32 (!%p192_p9), %s225_s20, 2 }
   0xf   : > { %s439_s23 = sshll.u32 (!%p192_p9), %s608_s19, 6  ;;  %s321_s6 = scalar_lea.sflag (!%p192_p9), [#allocation3], %s225_s20 }
  0x10   : > { %v253_v6 = vshrl.u32 (!%p192_p9), %v252_v5, 7 }
  0x12   : > { %v254_v8 = vsub.s32 (!%p192_p9), 0, %v253_v6  ;;  %v263_v10 = vsub.s32 (!%p192_p9), 1, %v253_v6  ;;  %v273_v12 = vsub.s32 (!%p192_p9), 2, %v253_v6  ;;  %v283_v14 = vsub.s32 (!%p192_p9), 3, %v253_v6 }
  0x15   : > { %s229_s27 = scalar_select %p228_p10, %s608_s19, 1 }
  0x16   : > { %s561_s19 = smov [#allocation2]  }
  0x17   : > { %s637_s28 = sshll.u32 %s229_s27, 2  ;;  %s227_s27 = scalar_lea.vmem [#allocation2], %s433_s22 }
  0x18   : > { %s235_s5 = scalar_lea.vmem %s703_s1, %s637_s28  ;;  %s231_s8 = scalar_lea.vmem %s702_s0, %s637_s28 }
  0x19   : > { %v246_v2 = vld [vmem:[%s235_s5] sm:$0xf]  ;;  %s239_s11 = scalar_lea.vmem %s704_s2, %s637_s28  ;;  %s243_s14 = scalar_lea.vmem %s705_s3, %s637_s28 }
  0x1a   : > { %249 = vperm.xlu0 %485, %v246_v2   ;;  %268 = vperm.xlu1 %487, %v246_v2   ;;  %v244_v7 = vld [vmem:[%s231_s8] sm:$0xf]  ;;  %s334_s29 = sshll.u32 %s227_s27, 4  ;;  %s660_s28 = scalar_lea.hbm %s706_s4, %s439_s23  ;;  %s662_s29 = int_to_ptr.vmem [resolvable:$true] %s334_s29 }
  0x1b   : > { %v245_v9 = vmax.f32 %v244_v7, 0.0  ;;  %v302_v39 = vld [vmem:[%s239_s11] sm:$0xf]  ;;  %s493_s7 = scalar_lea.vmem %s662_s29, 64  ;;  %s497_s8 = sshll.u32 %s561_s19, 4  ;;  %s498_s8 = int_to_ptr.vmem [resolvable:$false] %s497_s8 }
  0x1c   : > { %v304_v42 = vld [vmem:[%s243_s14] sm:$0xf]  ;;  %p494_p11 = scmp.ne.s32.totalorder %s662_s29, %s493_s7  ;;  %s499_s9 = scalar_lea.vmem %s498_s8, 128 }
  0x1d   : > { %v255_v15 = vrot.slane %v245_v9, %v254_v8  ;;  %v264_v16 = vrot.slane %v245_v9, %v263_v10  ;;  %v274_v17 = vrot.slane %v245_v9, %v273_v12  ;;  %v284_v18 = vrot.slane %v245_v9, %v283_v14  ;;  %p500_p0 = scmp.lt.s32.totalorder %s662_s29, %s498_s8  ;;  %p501_p1 = scmp.lt.s32.totalorder %s499_s9, %s493_s7 }
  0x1e   : > { %486 = vset.pattern.permute.xlu0 %v559_v3  ;;  %488 = vset.pattern.permute.xlu1 %v560_v4  ;;  %p495_p12 = pnand %p494_p11, %p625_p5 }
  0x1f   : > { %258 = vperm.xlu0 %486, %v246_v2   ;;  %278 = vperm.xlu1 %488, %v246_v2   ;;  %p502_p2 = por %p501_p1, %p500_p0 }
  0x20   : > { %p496_p13 = pneg %p495_p12 }
  0x22   : > { %p503_p3 = pnand %p502_p2, %p496_p13 }
  0x23   : > { %489 = vset.pattern.permute.xlu0 %v557_v0  ;;  %490 = vset.pattern.permute.xlu1 %v557_v0 }
  0x99   : > { %v250_v11 = vpop.permute.xlu0 %249  ;;  %v269_v13 = vpop.permute.xlu1 %268 }
  0x9a   : > { %v256_v21 = vmul.f32 %v255_v15, %v250_v11  ;;  %v275_v23 = vmul.f32 %v274_v17, %v269_v13 }
  0x9e   : > { %v259_v19 = vpop.permute.xlu0 %258  ;;  %v279_v20 = vpop.permute.xlu1 %278 }
  0x9f   : > { %v265_v22 = vmul.f32 %v264_v16, %v259_v19  ;;  %v285_v25 = vmul.f32 %v284_v18, %v279_v20 }
  0xa1   : > { %v266_v24 = vadd.f32 %v265_v22, %v256_v21 }
  0xa3   : > { %v276_v26 = vadd.f32 %v275_v23, %v266_v24 }
  0xa5   : > { %v286_v27 = vadd.f32 %v285_v25, %v276_v26 }
  0xa7   : > { %v288_v28 = vsel %vm287_vm0, %v286_v27, 0.0  ;;  %v291_v29 = vmul.f32 %v286_v27, %v286_v27 }
  0xa8   : > { %289 = vadd.xlane.f32.xlu1 %v288_v28 }
  0xa9   : > { %v292_v30 = vsel %vm287_vm0, %v291_v29, 0.0 }
  0xaa   : > { %293 = vadd.xlane.f32.xlu0 %v292_v30 }
 0x135   : > { %v290_v31 = vpop.xlane.xlu1 %289 }
 0x136   : > { %v295_v32 = vmul.f32 0.0078125, %v290_v31 }
 0x137   : > { %v294_v33 = vpop.xlane.xlu0 %293 }
 0x138   : > { %v297_v34 = vmul.f32 %v295_v32, %v295_v32  ;;  %v296_v35 = vmul.f32 0.0078125, %v294_v33 }
 0x13a   : > { %v298_v36 = vsub.f32 %v296_v35, %v297_v34 }
 0x13c   : > { %v299_v37 = vmax.f32 %v298_v36, 0.0 }
 0x13e   : > { %v300_v38 = vadd.f32 1e-05, %v299_v37 }
 0x140   : > { %491 = vrsqrt.f32 %v300_v38 }
 0x14a   : > { %v492_v40 = vpop.eup %491 }
 0x14b   : > { %v303_v41 = vmul.f32 %v492_v40, %v302_v39 }
 0x14d   : > { %309 = vperm.xlu0 %489, %v303_v41   ;;  %v305_v43 = vmul.f32 %v303_v41, %v295_v32 }
 0x14f   : > { %v306_v44 = vsub.f32 %v304_v42, %v305_v43 }
 0x151   : > { %315 = vperm.xlu1 %490, %v306_v44  }
 0x1cc   : > { %v310_v45 = vpop.permute.xlu0 %309 }
 0x1cd   : > { %v312_v46 = vmul.f32 %v310_v45, %v286_v27 }
 0x1d0   : > { %v316_v47 = vpop.permute.xlu1 %315 }
 0x1d1   : > { %v318_v48 = vadd.f32 %v316_v47, %v312_v46 }
 0x1d3   : > { %319 = vst [vmem:[%s227_s27] sm:$0xf] %v318_v48 }
 0x1d4   : > { %506 = shalt.err (!%p503_p3)
}
 0x1d5   : > { %s507_s10 = scalar_lea.hbm %s660_s28, 64  ;;  %s511_s13 = scalar_lea.hbm %s706_s4, 128 }
 0x1d6   : > { %p508_p4 = scmp.ne.s32.totalorder %s660_s28, %s507_s10  ;;  %p512_p9 = scmp.lt.u32.totalorder %s660_s28, %s706_s4 }
 0x1d7   : > { %p513_p10 = scmp.lt.u32.totalorder %s511_s13, %s507_s10  ;;  %p515_p12 = scmp.lt.u32.totalorder %s507_s10, %s660_s28 }
 0x1d8   : > { %p509_p7 = pnand %p508_p4, %p625_p5 }
 0x1d9   : > { %p514_p11 = por %p513_p10, %p512_p9 }
 0x1da   : > { %p510_p8 = pneg %p509_p7 }
 0x1db   : > { %p516_p13 = por %p515_p12, %p514_p11 }
 0x1dd   : > { %p517_p0 = pnand %p516_p13, %p510_p8 }
 0x1df   : > { %520 = shalt.err (!%p517_p0)
}
 0x1e0   : > { %442 = dma.vmem_to_hbm [thread:$0]  (%p625_p5), %s662_s29, 64, %s660_s28, %s321_s6  }
 0x1e1 PF: > { %p448_p1 = scmp.ge.s32.totalorder %s555_s18, 2  ;;  %s346_s22 = sand.u32 1, %s543_s15  }
 0x1e2   : > { %s347_s23 = scalar_lea.sflag [#allocation3], %s346_s22 }
 0x1e3   : > { %p445_p2 = pnand %p448_p1, %p629_p6 }
 0x1e5   : > { %538 = dma.done.wait (!%p445_p2), %s347_s23, 64  }
 0x1e6   : > { %540 = vsyncadd (!%p445_p2), %s347_s23, 4294967232  ;;  %p14_p3 = scmp.ge.s32.totalorder %s612_s21, 4   ;;  %s709_s15 = smov %s547_s16 }
 0x1e7   : > { %s710_s16 = smov %s551_s17  ;;  %s711_s17 = smov %s623_s24 }
 0x1e8   : > { %s712_s18 = smov %s612_s21  ;;  %16 = sbr.rel (!%p14_p3) target bundleno = 3 (0x3), region = 80 }
 0x1ef   :  { %352 = vsyncpa [#allocation3], 1 }
 0x1f0   :  { %354 = vsyncpa [#allocation3 + $0x1], 1 }

</bundles_post_ra>
